<compile_context>
chip_gen: v7x
topology: tpu7x:2x2x1
jax: 0.10.0
libtpu: 0.0.40
codegen_flags: <defaults>
</compile_context>

<pallas_src>
import numpy as np
import jax
import jax.numpy as jnp
from jax.experimental import pallas as pl
from jax.experimental.pallas import tpu as pltpu


def _round_up(a, b):
    return (a + b - 1) // b * b


def upsample_kernel(x_ref, w_ref, b_ref, o_ref):
    # x_ref: (tT, 3*Cin)  w_ref: (3*Cin, tC)  b_ref: (1, tC)  o_ref: (tT, tC)
    acc = jnp.dot(x_ref[...], w_ref[...], preferred_element_type=jnp.float32)
    o_ref[...] = (acc + b_ref[...]).astype(o_ref.dtype)


def make_effective_weight(v, g):
    # PyTorch weight_norm (dim=0) on ConvTranspose1d weight (Cin, Cout, K):
    #   w = g * v / ||v||, norm taken over dims (1, 2) per input channel.
    norm = jnp.sqrt(jnp.sum(v * v, axis=(1, 2), keepdims=True))
    return g * v / norm


def build_gathered_weight(w_eff, upsample_factor):
    # (Cin, Cout, K=2s) -> (3*Cin, s*Cout); row index = j*Cin + ci, col = r*Cout + co.
    Cin, Cout, K = w_eff.shape
    s = upsample_factor
    p = s // 2
    r = jnp.arange(s)
    k1 = r + p
    k0 = r + p + s
    k2 = r + p - s
    w1 = w_eff[:, :, k1]                                                      # (Cin,Cout,s)
    w0 = jnp.where((k0 < K)[None, None, :], w_eff[:, :, jnp.clip(k0, 0, K - 1)], 0.0)
    w2 = jnp.where((k2 >= 0)[None, None, :], w_eff[:, :, jnp.clip(k2, 0, K - 1)], 0.0)

    def to_mat(wk):  # (Cin, Cout, s) -> (Cin, s*Cout) with flat col index r*Cout + co
        return jnp.transpose(wk, (0, 2, 1)).reshape(Cin, s * Cout)

    return jnp.concatenate([to_mat(w0), to_mat(w1), to_mat(w2)], axis=0)      # (3*Cin, s*Cout)


def upsample_net_forward(x, v, g, bias, upsample_factor, *,
                         compute_dtype=jnp.bfloat16, out_dtype=jnp.float32,
                         tile_t=None, tile_c=None, channels_last=False):
    """x: (N, Cin, T) NCL like PyTorch. Returns (N, Cout, T*upsample_factor),
    or (N, T*upsample_factor, Cout) if channels_last=True (avoids one HBM pass)."""
    N, Cin, T = x.shape
    Cout = v.shape[1]
    s = upsample_factor
    Cin3 = 3 * Cin
    Ccols = s * Cout                       # flat output column index: r*Cout + co
    Cp = _round_up(Ccols, 128)             # lane-dense (unmasked) stores

    # --- column (lane) tile: multiple of 128, divides padded width ---
    if tile_c is None:
        if Cp <= 512:
            tile_c = Cp
        elif Cp % 512 == 0:
            tile_c = 512
        elif Cp % 256 == 0:
            tile_c = 256
        else:
            tile_c = 128
    assert Cp % tile_c == 0 and tile_c % 128 == 0
    n_c = Cp // tile_c

    # --- time (sublane) tile: multiple of 16 (bf16 packing), default 256 rows ---
    if tile_t is None:
        tile_t = min(256, _round_up(T, 16))
    tile_t = _round_up(tile_t, 16)
    Tp = _round_up(T, tile_t)
    n_t = Tp // tile_t

    # --- weights: fold weight_norm + conv-transpose gather into one matmul operand ---
    w_eff = make_effective_weight(v.astype(jnp.float32), g.astype(jnp.float32))
    w_flat = build_gathered_weight(w_eff, s)                          # (3*Cin, s*Cout)
    w_flat = jnp.pad(w_flat, ((0, 0), (0, Cp - Ccols))).astype(compute_dtype)
    bias_flat = jnp.pad(jnp.tile(bias.astype(jnp.float32), s),
                        (0, Cp - Ccols)).reshape(1, Cp)               # col r*Cout+co -> bias[co]

    # --- input: NCL -> time-major, fold the zero pad frames into the 3-frame unfold ---
    x_t = jnp.transpose(x, (0, 2, 1)).astype(compute_dtype)           # (N, T, Cin)
    zero = jnp.zeros((N, 1, Cin), compute_dtype)
    xpad = jnp.concatenate([zero, x_t, zero], axis=1)                 # (N, T+2, Cin)
    x3 = jnp.concatenate([xpad[:, 0:T], xpad[:, 1:T + 1], xpad[:, 2:T + 2]],
                         axis=-1)                                     # (N, T, 3*Cin)
    if Tp > T:
        x3 = jnp.pad(x3, ((0, 0), (0, Tp - T), (0, 0)))               # (N, Tp, 3*Cin)

    flops = 2 * N * Tp * Cin3 * Cp
    bytes_accessed = (x3.size * x3.dtype.itemsize
                      + w_flat.size * w_flat.dtype.itemsize
                      + bias_flat.size * bias_flat.dtype.itemsize
                      + N * Tp * Cp * jnp.dtype(out_dtype).itemsize)

    out_flat = pl.pallas_call(
        upsample_kernel,
        out_shape=jax.ShapeDtypeStruct((N, Tp, Cp), out_dtype),
        grid=(N, n_c, n_t),   # time innermost: the weight/bias column tile stays resident
        in_specs=[
            pl.BlockSpec((None, tile_t, Cin3), lambda n, c, t: (n, t, 0)),
            pl.BlockSpec((Cin3, tile_c), lambda n, c, t: (0, c)),
            pl.BlockSpec((1, tile_c), lambda n, c, t: (0, c)),
        ],
        out_specs=pl.BlockSpec((None, tile_t, tile_c), lambda n, c, t: (n, t, c)),
        compiler_params=pltpu.CompilerParams(
            dimension_semantics=("parallel", "parallel", "parallel"),
            vmem_limit_bytes=48 * 1024 * 1024),
        cost_estimate=pl.CostEstimate(flops=int(flops), transcendentals=0,
                                      bytes_accessed=int(bytes_accessed)),
    )(x3, w_flat, bias_flat)

    # crop the time/column padding; reshape (free) to (N, T*s, Cout)
    out = out_flat[:, :T, :Ccols].reshape(N, T * s, Cout)
    if channels_last:
        return out
    # TODO(synk): this NLC->NCL transpose is one extra XLA pass over the (largest) output;
    # downstream consumers that accept channels-last should set channels_last=True, or the
    # kernel could permute in VMEM and write NCL blocks directly.
    return jnp.transpose(out, (0, 2, 1))


def reference_forward(x, v, g, bias, upsample_factor):
    """Brute-force ConvTranspose1d (stride=s, padding=s//2) + crop, in plain f32 JAX."""
    s = upsample_factor
    K = v.shape[2]
    p = s // 2
    N, Cin, T = x.shape
    Cout = v.shape[1]
    w = make_effective_weight(v, g)                       # (Cin, Cout, K)
    Lfull = (T - 1) * s + K
    out = jnp.zeros((N, Cout, Lfull), jnp.float32)
    for t in range(T):
        contrib = jnp.einsum('nc,cok->nok', x[:, :, t], w)
        out = out.at[:, :, t * s:t * s + K].add(contrib)
    out = out[:, :, p:Lfull - p] + bias[None, :, None]    # remove transposed-conv padding
    return out[:, :, :T * s]                              # the forward()'s crop


if __name__ == "__main__":
    # (name, N, Cin, Cout, T, s, compute_dtype, tile_t, tile_c, rtol, atol)
    test_cases = [
        ("f32 even-s",        2, 4,  8,  8, 4, jnp.float32,  None, None, 1e-5, 1e-5),
        ("bf16 even-s",       2, 4,  8,  8, 4, jnp.bfloat16, None, None, 5e-2, 5e-2),
        ("f32 odd-s",         1, 3,  5, 12, 5, jnp.float32,  None, None, 1e-5, 1e-5),
        ("f32 multi-tile",    1, 6, 32, 24, 8, jnp.float32,  16,   128,  1e-5, 1e-5),
    ]
    key = jax.random.PRNGKey(0)
    for (name, N, Cin, Cout, T, s, cdt, tt, tc, rtol, atol) in test_cases:
        key, kx, kv, kg, kb = jax.random.split(key, 5)
        x = jax.random.normal(kx, (N, Cin, T), dtype=jnp.float32)
        v = jax.random.normal(kv, (Cin, Cout, 2 * s), dtype=jnp.float32) * 0.1   # weight_norm "v"
        g = jax.random.uniform(kg, (Cin, 1, 1), dtype=jnp.float32) + 0.5         # weight_norm "g"
        bias = jax.random.normal(kb, (Cout,), dtype=jnp.float32) * 0.1

        out = upsample_net_forward(x, v, g, bias, s, compute_dtype=cdt,
                                   tile_t=tt, tile_c=tc)
        out = jax.block_until_ready(out)
        assert out.shape == (N, Cout, T * s), (name, out.shape)

        ref = jax.block_until_ready(reference_forward(x, v, g, bias, s))
        np.testing.assert_allclose(np.asarray(out), np.asarray(ref),
                                   rtol=rtol, atol=atol, err_msg=name)

    print("KERNEL_OK")
</pallas_src>

<mosaic_0001>
module attributes {stable_mosaic.version = 11 : i64} {
  func.func @upsample_kernel(%arg0: i32, %arg1: i32, %arg2: i32, %arg3: memref<1x16x12xf32, #tpu.memory_space<vmem>>, %arg4: memref<12x128xf32, #tpu.memory_space<vmem>>, %arg5: memref<1x128xf32, #tpu.memory_space<vmem>>, %arg6: memref<1x16x128xf32, #tpu.memory_space<vmem>>) attributes {dimension_semantics = [#tpu.dimension_semantics<parallel>, #tpu.dimension_semantics<parallel>, #tpu.dimension_semantics<parallel>], iteration_bounds = array<i64: 2, 1, 1>, scalar_prefetch = 0 : i64, scratch_operands = 0 : i64, tpu.core_type = #tpu.core_type<tc>, window_params = [{transform_indices = @transform_0, window_bounds = array<i64: 1, 16, 12>}, {transform_indices = @transform_1, window_bounds = array<i64: 12, 128>}, {transform_indices = @transform_2, window_bounds = array<i64: 1, 128>}, {transform_indices = @transform_3, window_bounds = array<i64: 1, 16, 128>}]} {
    %c0 = arith.constant 0 : index
    %c0_0 = arith.constant 0 : index
    %c0_1 = arith.constant 0 : index
    %0 = vector.load %arg3[%c0, %c0_0, %c0_1] : memref<1x16x12xf32, #tpu.memory_space<vmem>>, vector<1x16x12xf32>
    %1 = vector.shape_cast %0 : vector<1x16x12xf32> to vector<16x12xf32>
    %c0_2 = arith.constant 0 : index
    %c0_3 = arith.constant 0 : index
    %2 = vector.load %arg4[%c0_2, %c0_3] : memref<12x128xf32, #tpu.memory_space<vmem>>, vector<12x128xf32>
    %cst = arith.constant dense<0.000000e+00> : vector<16x128xf32>
    %3 = tpu.matmul %1, %2, %cst {dimension_numbers = #tpu.dot_dimension_numbers<[1], [0], [0], [1], [0, 0, 1, 1], [], []>} : vector<16x12xf32>, vector<12x128xf32>, vector<16x128xf32> -> vector<16x128xf32>
    %c0_4 = arith.constant 0 : index
    %c0_5 = arith.constant 0 : index
    %4 = vector.load %arg5[%c0_4, %c0_5] : memref<1x128xf32, #tpu.memory_space<vmem>>, vector<1x128xf32>
    %5 = vector.broadcast %4 : vector<1x128xf32> to vector<16x128xf32>
    %6 = arith.addf %3, %5 : vector<16x128xf32>
    %c0_6 = arith.constant 0 : index
    %c0_7 = arith.constant 0 : index
    %c0_8 = arith.constant 0 : index
    %7 = vector.load %arg6[%c0_6, %c0_7, %c0_8] : memref<1x16x128xf32, #tpu.memory_space<vmem>>, vector<1x16x128xf32>
    %8 = vector.shape_cast %7 : vector<1x16x128xf32> to vector<16x128xf32>
    %9 = vector.shape_cast %6 : vector<16x128xf32> to vector<1x16x128xf32>
    tpu.vector_store %arg6[%c0_6, %c0_7, %c0_8], %9 {strides = array<i32>} : memref<1x16x128xf32, #tpu.memory_space<vmem>>, vector<1x16x128xf32>,
    return
  }
  func.func @transform_0(%arg0: i32, %arg1: i32, %arg2: i32) -> (i32, i32, i32) {
    %c0_i32 = arith.constant 0 : i32
    %c0_i32_0 = arith.constant 0 : i32
    return %arg0, %arg2, %c0_i32 : i32, i32, i32
  }
  func.func @transform_1(%arg0: i32, %arg1: i32, %arg2: i32) -> (i32, i32) {
    %c0_i32 = arith.constant 0 : i32
    %c0_i32_0 = arith.constant 0 : i32
    return %c0_i32, %arg1 : i32, i32
  }
  func.func @transform_2(%arg0: i32, %arg1: i32, %arg2: i32) -> (i32, i32) {
    %c0_i32 = arith.constant 0 : i32
    %c0_i32_0 = arith.constant 0 : i32
    return %c0_i32, %arg1 : i32, i32
  }
  func.func @transform_3(%arg0: i32, %arg1: i32, %arg2: i32) -> (i32, i32, i32) {
    %c0_i32 = arith.constant 0 : i32
    return %arg0, %arg2, %arg1 : i32, i32, i32
  }
}

</mosaic_0001>

<bundles_post_ra>
// kernel: tpu_custom_call.1
= control target key start
LH: loop header
LB: loop body
LE: loop exit
PB: predicated region body
PF: predicated region fallthrough
CT: control target
= control target key end

     0   :  { %8 = vsyncpa [#allocation3], 0  ;;  %s790_s0 = inlined_call_operand.vmem [shape: f32[2,16,12], index: 0, kind: input, shape index: {}]   ;;  %s791_s1 = inlined_call_operand.vmem [shape: f32[12,128], index: 1, kind: input, shape index: {}]   ;;  %s792_s2 = inlined_call_operand.vmem [shape: f32[1,128], index: 2, kind: input, shape index: {}]   ;;  %s793_s3 = inlined_call_operand.hbm [shape: f32[2,16,128], index: 3, kind: output, shape index: {}]  }
   0x1   :  { %10 = vsyncpa [#allocation3 + $0x1], 0  ;;  %s666_s12 = smov 0   ;;  %s668_s13 = smov 0  }
   0x2   :  { %s670_s14 = smov 0   ;;  %s672_s15 = smov 0  }
   0x3   :  { %s674_s16 = smov 0   ;;  %s676_s17 = smov 0  }
   0x4 LB: > { %s466_s18 = sadd.s32 4294967295, %s640_s17   ;;  %s467_s19 = sadd.s32 4294967294, %s640_s17   ;;  %s640_s17 = sphi %s676_s17, %s16_s17   ;;  %s636_s16 = sphi %s674_s16, %s800_s16   ;;  %s632_s15 = sphi %s672_s15, %s799_s15   ;;  %s628_s14 = sphi %s670_s14, %s798_s14   ;;  %s624_s13 = sphi %s668_s13, %s797_s13   ;;  %s620_s12 = sphi %s666_s12, %s796_s12  }
   0x5   : > { %s35_s20 = sadd.s32 1, %s636_s16  ;;  %s126_s21 = sadd.s32 1, %s628_s14 }
   0x6   : > { %p37_p0 = scmp.ge.s32.totalorder %s35_s20, 2  ;;  %p136_p1 = scmp.ne.s32.totalorder %s628_s14, %s624_s13 }
   0x7   : > { %p137_p2 = scmp.eq.s32.totalorder %s466_s18, 1  ;;  %p142_p3 = scmp.ne.s32.totalorder %s624_s13, %s620_s12 }
   0x8   : > { %s802_s20 = smov (%p37_p0, %s35_s20), 0  ;;  %p143_p5 = scmp.eq.s32.totalorder %s467_s19, 1 }
   0x9   : > { %p706_p4 = por %p137_p2, %p136_p1  ;;  %s119_s23 = ssub.s32 %s636_s16, %s802_s20 }
   0xa   : > { %p472_p6 = scmp.ge.s32.totalorder %s640_s17, 1  ;;  %p124_p7 = scmp.eq.s32.totalorder %s119_s23, 0 }
   0xb   : > { %p713_p8 = por %p143_p5, %p142_p3  ;;  %p187_p9 = scmp.lt.s32.totalorder %s640_s17, 3 }
   0xc   : > { %s719_s25 = scalar_select %p124_p7, %s628_s14, %s126_s21  }
   0xd   : > { %p188_p10 = pnand %p472_p6, %p187_p9 }
   0xe   : > { %v242_v0 = vld [vmem:[%s791_s1] sm:$0xff] (!%p188_p10)  ;;  %v243_v1 = vld [vmem:[%s791_s1 + $0x8] sm:$0xf] (!%p188_p10)  ;;  %vm258_vm0 = vcmask (!%p188_p10), 1043456   ;;  %p223_p11 = scmp.lt.s32.totalorder (!%p188_p10), %s632_s15, 1  ;;  %vm642_vm1 = vmmov (!%p188_p10), 1  }
   0xf   : > { %191 = sbr.rel (%p188_p10) target bundleno = 258 (0x102), region = 32  ;;  %v498_v2 = vpack.c.bf16 (!%p188_p10), %v243_v1, %v242_v0  ;;  %vm499_vm2 = vmpackc.low (!%p188_p10), %vm258_vm0, %vm642_vm1  ;;  %vm251_vm3 = vcmask (!%p188_p10), 97280   ;;  %s219_s8 = sand.u32 (!%p188_p10), 1, %s624_s13   ;;  %v476_v5 = vld [vmem:[%s792_s2] ss:$0 sm:$0xff] (!%p188_p10) }
  0x10   : > { %s473_s9 = sshll.u32 (!%p188_p10), %s219_s8, 4  ;;  %s486_s21 = sshll.u32 (!%p188_p10), %s632_s15, 8 }
  0x11   : > { %500 = vmatprep.subr.msk.bf16.mxu0 (!%p188_p10), %vm499_vm2, %v498_v2  ;;  %s221_s18 = scalar_lea.vmem (!%p188_p10), [#allocation2], %s473_s9  ;;  %s742_s27 = scalar_lea.hbm (!%p188_p10), %s793_s3, %s486_s21 }
  0x12   : > { %503 = vmatpush3.bf16.msk.msra.mxu0 (!%p188_p10), %vm499_vm2, %v498_v2  ;;  %s356_s19 = sshll.u32 (!%p188_p10), %s221_s18, 4  ;;  %s744_s28 = scalar_lea.sflag (!%p188_p10), [#allocation3], %s219_s8  ;;  %s737_s19 = int_to_ptr.vmem [resolvable:$true] %s356_s19 }
  0x13   : > { %s562_s29 = scalar_lea.vmem (!%p188_p10), %s737_s19, 256 }
  0x14   : > { %p563_p12 = scmp.ne.s32.totalorder (!%p188_p10), %s737_s19, %s562_s29 }
  0x16   : > { %s224_s30 = scalar_select %p223_p11, %s632_s15, 1 }
  0x17   : > { %p564_p13 = pnand %p563_p12, %p706_p4  ;;  %s643_s15 = smov [#allocation2]  }
  0x18   : > { %s485_s4 = sshll.u32 %s224_s30, 4  ;;  %s566_s30 = sshll.u32 %s643_s15, 4  ;;  %s567_s30 = int_to_ptr.vmem [resolvable:$false] %s566_s30 }
  0x19   : > { %s230_s7 = scalar_lea.vmem %s790_s0, %s485_s4  ;;  %p565_p0 = pneg %p564_p13 }
  0x1a   : > { %v240_v3 = vld [vmem:[%s230_s7] sm:$0xff]  ;;  %v241_v4 = vld [vmem:[%s230_s7 + $0x8] sm:$0xff]  ;;  %s568_s4 = scalar_lea.vmem %s567_s30, 512  ;;  %p569_p1 = scmp.lt.s32.totalorder %s737_s19, %s567_s30 }
  0x1b   : > { %495 = vmatprep.mubr.msk.f32.mxu0 %vm251_vm3, %v240_v3  ;;  %p570_p2 = scmp.lt.s32.totalorder %s568_s4, %s562_s29 }
  0x1c   : > { %496 = vmatmul.mubr.msk.f32.vlgmr.msra.gmra.mrb[0].mxu0 %vm251_vm3, %v241_v4 }
  0x1d   : > { %p571_p3 = por %p570_p2, %p569_p1 }
  0x1f   : > { %p572_p5 = pnand %p571_p3, %p565_p0 }
  0xef   : > { %v497_v6 = vpop.f32.mrb[0].mxu0 }
  0xf0   : > { %v334_v7 = vadd.f32 %v497_v6, %v476_v5  ;;  %v328_v8 = vpop.f32.mrb[1].mxu0 }
  0xf1   : > { %v329_v9 = vadd.f32 %v476_v5, %v328_v8 }
  0xf2   : > { %338 = vst [vmem:[%s221_s18 + $0x8] sm:$0xff] %v334_v7 }
  0xf3   : > { %337 = vst [vmem:[%s221_s18] sm:$0xff] %v329_v9 }
  0xf4   : > { %575 = shalt.err (!%p572_p5)
}
  0xf5   : > { %s576_s5 = scalar_lea.hbm %s742_s27, 256  ;;  %s580_s8 = scalar_lea.hbm %s793_s3, 512 }
  0xf6   : > { %p577_p6 = scmp.ne.s32.totalorder %s742_s27, %s576_s5  ;;  %p581_p10 = scmp.lt.u32.totalorder %s742_s27, %s793_s3 }
  0xf7   : > { %p582_p11 = scmp.lt.u32.totalorder %s580_s8, %s576_s5  ;;  %p584_p13 = scmp.lt.u32.totalorder %s576_s5, %s742_s27 }
  0xf8   : > { %p578_p7 = pnand %p577_p6, %p706_p4 }
  0xf9   : > { %p583_p12 = por %p582_p11, %p581_p10 }
  0xfa   : > { %p579_p9 = pneg %p578_p7 }
  0xfb   : > { %p585_p0 = por %p584_p13, %p583_p12 }
  0xfd   : > { %p586_p1 = pnand %p585_p0, %p579_p9 }
  0xff   : > { %589 = shalt.err (!%p586_p1)
}
 0x100   : > { %s644_s11 = smov 128   ;;  %s645_s18 = smov 8  }
 0x101   : > { %504 = dma.vmem_to_hbm [thread:$0]  (%p706_p4), %s737_s19, 256, %s742_s27, %s744_s28, %s644_s11, %s644_s11, %s645_s18  }
 0x102 PF: > { %p510_p2 = scmp.ge.s32.totalorder %s640_s17, 2  ;;  %s371_s21 = sand.u32 1, %s620_s12  }
 0x103   : > { %s372_s23 = scalar_lea.sflag [#allocation3], %s371_s21 }
 0x104   : > { %p507_p3 = pnand %p510_p2, %p713_p8 }
 0x106   : > { %615 = dma.done.wait (!%p507_p3), %s372_s23, 256  }
 0x107   : > { %617 = vsyncadd (!%p507_p3), %s372_s23, 4294967040  ;;  %s16_s17 = sadd.s32 1, %s640_s17   ;;  %s796_s12 = smov %s624_s13 }
 0x108   : > { %p13_p5 = scmp.ge.s32.totalorder %s16_s17, 4   ;;  %s797_s13 = smov %s628_s14 }
 0x109   : > { %s798_s14 = smov %s719_s25  ;;  %s799_s15 = smov %s636_s16 }
 0x10a   : > { %s800_s16 = smov %s802_s20  ;;  %15 = sbr.rel (!%p13_p5) target bundleno = 4 (0x4), region = 73 }
 0x111   :  { %377 = vsyncpa [#allocation3], 1 }
 0x112   :  { %379 = vsyncpa [#allocation3 + $0x1], 1 }

</bundles_post_ra>
